<compile_context>
chip_gen: v6e
topology: v6e:2x2x1
jax: 0.10.0
libtpu: 0.0.40
codegen_flags: <defaults>
</compile_context>

<pallas_src>
import jax
import jax.numpy as jnp
from jax.experimental import pallas as pl
from jax.experimental.pallas import tpu as pltpu


def _round_up(n, m):
    return ((n + m - 1) // m) * m


def _cdiv(a, b):
    return -(-a // b)


def iactor_kernel(x_ref, w1_ref, b1_ref, w2_ref, b2_ref, w3_ref, b3_ref, out_ref):
    x = x_ref[...]

    # fc1 + ReLU: bf16 operands on the MXU, f32 accumulation / elementwise.
    h1 = jnp.dot(x.astype(jnp.bfloat16), w1_ref[...],
                 preferred_element_type=jnp.float32) + b1_ref[...]
    h1 = jnp.maximum(h1, 0.0)

    # fc2 + ReLU
    h2 = jnp.dot(h1.astype(jnp.bfloat16), w2_ref[...],
                 preferred_element_type=jnp.float32) + b2_ref[...]
    h2 = jnp.maximum(h2, 0.0)

    # fc3 + softmax over the real (unpadded) last axis.
    logits = jnp.dot(h2.astype(jnp.bfloat16), w3_ref[...],
                     preferred_element_type=jnp.float32) + b3_ref[...]
    m = jnp.max(logits, axis=-1, keepdims=True)
    e = jnp.exp(logits - m)
    denom = jnp.sum(e, axis=-1, keepdims=True)
    out_ref[...] = e / denom  # exact divide: rows sum to 1 to f32 precision


def init_params(key, input_space, output_space):
    """Deterministic synthetic parameters matching IActor's layer shapes.

    Stored as (in, out); PyTorch nn.Linear holds (out, in) and applies x @ W.T,
    so x @ W + b here is semantically identical.
    """
    ks = jax.random.split(key, 6)
    w1 = jax.random.normal(ks[0], (input_space, 64), jnp.float32) * 0.1
    b1 = jax.random.normal(ks[1], (1, 64), jnp.float32) * 0.1
    w2 = jax.random.normal(ks[2], (64, 32), jnp.float32) * 0.1
    b2 = jax.random.normal(ks[3], (1, 32), jnp.float32) * 0.1
    w3 = jax.random.normal(ks[4], (32, output_space), jnp.float32) * 0.1
    b3 = jax.random.normal(ks[5], (1, output_space), jnp.float32) * 0.1
    return (w1, b1, w2, b2, w3, b3)


def prep_params(params):
    """One-time parameter prep: weights -> bf16 (MXU-native), biases stay f32."""
    w1, b1, w2, b2, w3, b3 = params
    return (w1.astype(jnp.bfloat16), b1,
            w2.astype(jnp.bfloat16), b2,
            w3.astype(jnp.bfloat16), b3)


def _plan_batch_tiling(B, tm):
    """Pick batch tile size / grid.

    - tiles are at most `tm` rows (default 1024: per-step overhead amortized);
    - batches >= 64 rows always get >= 2 grid steps (v7x megacore);
    - the batch is padded only up to a multiple of the (row-aligned) tile,
      which is ~B/num_tiles, so padding waste is bounded by 7 rows per tile.
    """
    num_tiles = _cdiv(B, tm)
    if B >= 64:
        num_tiles = max(num_tiles, 2)
    tm_eff = _round_up(_cdiv(B, num_tiles), 8)
    b_pad = _round_up(B, tm_eff)
    grid = b_pad // tm_eff
    return tm_eff, b_pad, grid


def iactor_forward(x, prepped_params, output_space, *, tm=1024):
    """Run the IActor forward pass via one pallas_call."""
    w1, b1, w2, b2, w3, b3 = prepped_params
    B, in_dim = x.shape

    tm_eff, b_pad, grid = _plan_batch_tiling(B, tm)

    x_p = x if b_pad == B else jnp.pad(x, ((0, b_pad - B), (0, 0)))

    const = lambda shape: pl.BlockSpec(shape, lambda i: (0, 0))

    out = pl.pallas_call(
        iactor_kernel,
        out_shape=jax.ShapeDtypeStruct((b_pad, output_space), jnp.float32),
        grid=(grid,),
        in_specs=[
            pl.BlockSpec((tm_eff, in_dim), lambda i: (i, 0)),  # x: tiled over batch
            const(w1.shape), const(b1.shape),                  # weights/biases: VMEM-resident
            const(w2.shape), const(b2.shape),
            const(w3.shape), const(b3.shape),
        ],
        out_specs=pl.BlockSpec((tm_eff, output_space), lambda i: (i, 0)),
        compiler_params=pltpu.CompilerParams(
            dimension_semantics=("parallel",),  # shards batch tiles across TCs on v7x
        ),
    )(x_p, w1, b1, w2, b2, w3, b3)

    return out if b_pad == B else out[:B]


def reference_forward(x, params):
    w1, b1, w2, b2, w3, b3 = params
    h1 = jax.nn.relu(x @ w1 + b1)
    h2 = jax.nn.relu(h1 @ w2 + b2)
    return jax.nn.softmax(h2 @ w3 + b3, axis=-1)


if __name__ == "__main__":
    key = jax.random.PRNGKey(0)
    k_x, k_p = jax.random.split(key)

    batch = 8
    input_space = 16
    output_space = 8

    x = jax.random.normal(k_x, (batch, input_space), jnp.float32)
    params = init_params(k_p, input_space, output_space)
    prepped = prep_params(params)

    out = iactor_forward(x, prepped, output_space)
    jax.block_until_ready(out)

    ref = reference_forward(x, params)
    assert out.shape == (batch, output_space)
    # bf16 matmul operands (f32 accumulate) vs. the f32 reference -> loose tol.
    assert jnp.allclose(out, ref, atol=2e-2, rtol=2e-2), "mismatch vs reference"
    # exact divide: probability rows sum to 1 to f32 precision
    assert jnp.allclose(jnp.sum(out, axis=-1), jnp.ones((batch,)), atol=1e-5)

    print("KERNEL_OK")
</pallas_src>

<mosaic_0001>
module attributes {stable_mosaic.version = 11 : i64} {
  func.func @iactor_kernel(%arg0: i32, %arg1: memref<8x16xf32, #tpu.memory_space<vmem>>, %arg2: memref<16x64xbf16, #tpu.memory_space<vmem>>, %arg3: memref<1x64xf32, #tpu.memory_space<vmem>>, %arg4: memref<64x32xbf16, #tpu.memory_space<vmem>>, %arg5: memref<1x32xf32, #tpu.memory_space<vmem>>, %arg6: memref<32x8xbf16, #tpu.memory_space<vmem>>, %arg7: memref<1x8xf32, #tpu.memory_space<vmem>>, %arg8: memref<8x8xf32, #tpu.memory_space<vmem>>) attributes {dimension_semantics = [#tpu.dimension_semantics<parallel>], iteration_bounds = array<i64: 1>, scalar_prefetch = 0 : i64, scratch_operands = 0 : i64, tpu.core_type = #tpu.core_type<tc>, window_params = [{transform_indices = @transform_0, window_bounds = array<i64: 8, 16>}, {pipeline_mode = #tpu.pipeline_mode<synchronous>, transform_indices = @transform_1, window_bounds = array<i64: 16, 64>}, {pipeline_mode = #tpu.pipeline_mode<synchronous>, transform_indices = @transform_2, window_bounds = array<i64: 1, 64>}, {pipeline_mode = #tpu.pipeline_mode<synchronous>, transform_indices = @transform_3, window_bounds = array<i64: 64, 32>}, {pipeline_mode = #tpu.pipeline_mode<synchronous>, transform_indices = @transform_4, window_bounds = array<i64: 1, 32>}, {pipeline_mode = #tpu.pipeline_mode<synchronous>, transform_indices = @transform_5, window_bounds = array<i64: 32, 8>}, {pipeline_mode = #tpu.pipeline_mode<synchronous>, transform_indices = @transform_6, window_bounds = array<i64: 1, 8>}, {transform_indices = @transform_7, window_bounds = array<i64: 8, 8>}]} {
    %c0 = arith.constant 0 : index
    %c0_0 = arith.constant 0 : index
    %0 = vector.load %arg1[%c0, %c0_0] : memref<8x16xf32, #tpu.memory_space<vmem>>, vector<8x16xf32>
    %1 = arith.truncf %0 : vector<8x16xf32> to vector<8x16xbf16>
    %c0_1 = arith.constant 0 : index
    %c0_2 = arith.constant 0 : index
    %2 = vector.load %arg2[%c0_1, %c0_2] : memref<16x64xbf16, #tpu.memory_space<vmem>>, vector<16x64xbf16>
    %cst = arith.constant dense<0.000000e+00> : vector<8x64xf32>
    %3 = tpu.matmul %1, %2, %cst {dimension_numbers = #tpu.dot_dimension_numbers<[1], [0], [0], [1], [0, 0, 1, 1], [], []>} : vector<8x16xbf16>, vector<16x64xbf16>, vector<8x64xf32> -> vector<8x64xf32>
    %c0_3 = arith.constant 0 : index
    %c0_4 = arith.constant 0 : index
    %4 = vector.load %arg3[%c0_3, %c0_4] : memref<1x64xf32, #tpu.memory_space<vmem>>, vector<1x64xf32>
    %5 = vector.broadcast %4 : vector<1x64xf32> to vector<8x64xf32>
    %6 = arith.addf %3, %5 : vector<8x64xf32>
    %cst_5 = arith.constant 0.000000e+00 : f32
    %7 = vector.broadcast %cst_5 : f32 to vector<8x64xf32>
    %8 = arith.maximumf %6, %7 : vector<8x64xf32>
    %9 = arith.truncf %8 : vector<8x64xf32> to vector<8x64xbf16>
    %c0_6 = arith.constant 0 : index
    %c0_7 = arith.constant 0 : index
    %10 = vector.load %arg4[%c0_6, %c0_7] : memref<64x32xbf16, #tpu.memory_space<vmem>>, vector<64x32xbf16>
    %cst_8 = arith.constant dense<0.000000e+00> : vector<8x32xf32>
    %11 = tpu.matmul %9, %10, %cst_8 {dimension_numbers = #tpu.dot_dimension_numbers<[1], [0], [0], [1], [0, 0, 1, 1], [], []>} : vector<8x64xbf16>, vector<64x32xbf16>, vector<8x32xf32> -> vector<8x32xf32>
    %c0_9 = arith.constant 0 : index
    %c0_10 = arith.constant 0 : index
    %12 = vector.load %arg5[%c0_9, %c0_10] : memref<1x32xf32, #tpu.memory_space<vmem>>, vector<1x32xf32>
    %13 = vector.broadcast %12 : vector<1x32xf32> to vector<8x32xf32>
    %14 = arith.addf %11, %13 : vector<8x32xf32>
    %cst_11 = arith.constant 0.000000e+00 : f32
    %15 = vector.broadcast %cst_11 : f32 to vector<8x32xf32>
    %16 = arith.maximumf %14, %15 : vector<8x32xf32>
    %17 = arith.truncf %16 : vector<8x32xf32> to vector<8x32xbf16>
    %c0_12 = arith.constant 0 : index
    %c0_13 = arith.constant 0 : index
    %18 = vector.load %arg6[%c0_12, %c0_13] : memref<32x8xbf16, #tpu.memory_space<vmem>>, vector<32x8xbf16>
    %cst_14 = arith.constant dense<0.000000e+00> : vector<8x8xf32>
    %19 = tpu.matmul %17, %18, %cst_14 {dimension_numbers = #tpu.dot_dimension_numbers<[1], [0], [0], [1], [0, 0, 1, 1], [], []>} : vector<8x32xbf16>, vector<32x8xbf16>, vector<8x8xf32> -> vector<8x8xf32>
    %c0_15 = arith.constant 0 : index
    %c0_16 = arith.constant 0 : index
    %20 = vector.load %arg7[%c0_15, %c0_16] : memref<1x8xf32, #tpu.memory_space<vmem>>, vector<1x8xf32>
    %21 = vector.broadcast %20 : vector<1x8xf32> to vector<8x8xf32>
    %22 = arith.addf %19, %21 : vector<8x8xf32>
    %cst_17 = arith.constant dense<0xFF800000> : vector<8xf32>
    %23 = vector.multi_reduction <maximumf>, %22, %cst_17 [1] : vector<8x8xf32> to vector<8xf32>
    %24 = vector.shape_cast %23 : vector<8xf32> to vector<8x1xf32>
    %25 = vector.broadcast %24 : vector<8x1xf32> to vector<8x8xf32>
    %26 = arith.subf %22, %25 : vector<8x8xf32>
    %27 = math.exp %26 : vector<8x8xf32>
    %cst_18 = arith.constant dense<0.000000e+00> : vector<8xf32>
    %28 = vector.multi_reduction <add>, %27, %cst_18 [1] : vector<8x8xf32> to vector<8xf32>
    %29 = vector.shape_cast %28 : vector<8xf32> to vector<8x1xf32>
    %30 = vector.broadcast %29 : vector<8x1xf32> to vector<8x8xf32>
    %31 = arith.divf %27, %30 : vector<8x8xf32>
    %c0_19 = arith.constant 0 : index
    %c0_20 = arith.constant 0 : index
    %32 = vector.load %arg8[%c0_19, %c0_20] : memref<8x8xf32, #tpu.memory_space<vmem>>, vector<8x8xf32>
    tpu.vector_store %arg8[%c0_19, %c0_20], %31 {strides = array<i32>} : memref<8x8xf32, #tpu.memory_space<vmem>>, vector<8x8xf32>,
    return
  }
  func.func @transform_0(%arg0: i32) -> (i32, i32) {
    %c0_i32 = arith.constant 0 : i32
    %c0_i32_0 = arith.constant 0 : i32
    return %arg0, %c0_i32 : i32, i32
  }
  func.func @transform_1(%arg0: i32) -> (i32, i32) {
    %c0_i32 = arith.constant 0 : i32
    %c0_i32_0 = arith.constant 0 : i32
    %c0_i32_1 = arith.constant 0 : i32
    return %c0_i32, %c0_i32_0 : i32, i32
  }
  func.func @transform_2(%arg0: i32) -> (i32, i32) {
    %c0_i32 = arith.constant 0 : i32
    %c0_i32_0 = arith.constant 0 : i32
    %c0_i32_1 = arith.constant 0 : i32
    return %c0_i32, %c0_i32_0 : i32, i32
  }
  func.func @transform_3(%arg0: i32) -> (i32, i32) {
    %c0_i32 = arith.constant 0 : i32
    %c0_i32_0 = arith.constant 0 : i32
    %c0_i32_1 = arith.constant 0 : i32
    return %c0_i32, %c0_i32_0 : i32, i32
  }
  func.func @transform_4(%arg0: i32) -> (i32, i32) {
    %c0_i32 = arith.constant 0 : i32
    %c0_i32_0 = arith.constant 0 : i32
    %c0_i32_1 = arith.constant 0 : i32
    return %c0_i32, %c0_i32_0 : i32, i32
  }
  func.func @transform_5(%arg0: i32) -> (i32, i32) {
    %c0_i32 = arith.constant 0 : i32
    %c0_i32_0 = arith.constant 0 : i32
    %c0_i32_1 = arith.constant 0 : i32
    return %c0_i32, %c0_i32_0 : i32, i32
  }
  func.func @transform_6(%arg0: i32) -> (i32, i32) {
    %c0_i32 = arith.constant 0 : i32
    %c0_i32_0 = arith.constant 0 : i32
    %c0_i32_1 = arith.constant 0 : i32
    return %c0_i32, %c0_i32_0 : i32, i32
  }
  func.func @transform_7(%arg0: i32) -> (i32, i32) {
    %c0_i32 = arith.constant 0 : i32
    %c0_i32_0 = arith.constant 0 : i32
    return %arg0, %c0_i32 : i32, i32
  }
}

</mosaic_0001>

<bundles_post_ra>
// kernel: tpu_custom_call.1
= control target key start
LH: loop header
LB: loop body
LE: loop exit
PB: predicated region body
PF: predicated region fallthrough
CT: control target
= control target key end

     0   :  { %v355_v1 = vmov 0.0   ;;  %vm45_vm0 = vcmask 130048   ;;  %vm356_vm1 = vmmov 0   ;;  %s437_s0 = inlined_call_operand.vmem [shape: f32[8,16], index: 0, kind: input, shape index: {}]   ;;  %s438_s1 = inlined_call_operand.vmem [shape: bf16[16,64], index: 1, kind: input, shape index: {}]   ;;  %s439_s2 = inlined_call_operand.vmem [shape: f32[1,64], index: 2, kind: input, shape index: {}]   ;;  %s440_s3 = inlined_call_operand.vmem [shape: bf16[64,32], index: 3, kind: input, shape index: {}]   ;;  %s441_s4 = inlined_call_operand.vmem [shape: f32[1,32], index: 4, kind: input, shape index: {}]   ;;  %s442_s5 = inlined_call_operand.vmem [shape: bf16[32,8], index: 5, kind: input, shape index: {}]   ;;  %s443_s6 = inlined_call_operand.vmem [shape: f32[1,8], index: 6, kind: input, shape index: {}]   ;;  %s444_s7 = inlined_call_operand.hbm [shape: f32[8,8], index: 7, kind: output, shape index: {}]  }
   0x1   :  { %v322_v0 = vld [vmem:[%s438_s1] sm:$0xff]   ;;  %293 = vmatprep.subr.bf16.mxu0 %v355_v1  ;;  %299 = vmatprep.subr.bf16.mxu1 %v355_v1  ;;  %v323_v3 = vld [vmem:[%s440_s3 + $0x18] sm:$0xff]   ;;  %v324_v5 = vld [vmem:[%s440_s3 + $0x10] sm:$0xff]  }
   0x2   :  { %v28_v2 = vld [vmem:[%s437_s0] sm:$0xff]  ;;  %294 = vmatpush3.bf16.msra.mxu0 %v322_v0  ;;  %295 = vmatprep.mubr.msk.bf16.mxu0 %vm356_vm1, %v355_v1 }
   0x3   :  { %v29_v4 = vpack.c.bf16 %v28_v2, %v28_v2  ;;  %300 = vmatpush3.bf16.msra.mxu1 %v323_v3  ;;  %307 = vmatprep.mubr.msk.bf16.mxu1 %vm356_vm1, %v355_v1 }
   0x4   :  { %301 = vmatprep.subr.bf16.mxu1 %v355_v1  ;;  %311 = vmatprep.subr.bf16.mxu0 %v355_v1 }
   0x5   :  { %296 = vmatmul.mubr.msk.bf16.vlgmr.msra.gmra.mxu0 %vm45_vm0, %v29_v4 }
   0x6   :  { %315 = vmatprep.mubr.msk.bf16.mxu0 %vm356_vm1, %v355_v1 }
   0x7   :  { %12 = vsyncpa [#allocation3], 0  ;;  %302 = vmatpush3.bf16.msra.mxu1 %v324_v5  ;;  %v325_v6 = vld [vmem:[%s440_s3 + $0x8] sm:$0xff]   ;;  %v326_v7 = vld [vmem:[%s440_s3] sm:$0xff]   ;;  %vm130_vm2 = vcmask 523264   ;;  %vm199_vm3 = vcmask 261120  }
   0x8   :  { %303 = vmatprep.subr.bf16.mxu1 %v355_v1  ;;  %v327_v8 = vld [vmem:[%s442_s5 + $0x8] sm:$0xff]   ;;  %v270_v9 = vld [vmem:[%s439_s2] ss:$0 sm:$0xff]  ;;  %vm243_vm4 = vcmask 64512  }
   0x9   :  { %312 = vmatpush3.bf16.msra.mxu0 %v327_v8  ;;  %v328_v17 = vld [vmem:[%s442_s5] sm:$0xff]  }
   0xa   :  { %313 = vmatprep.subr.bf16.mxu0 %v355_v1  ;;  %v273_v18 = vld [vmem:[%s441_s4] ss:$0 sm:$0xff]  ;;  %s357_s4 = smov [#allocation2]  }
   0xb   :  { %304 = vmatpush3.bf16.msra.mxu1 %v325_v6  ;;  %v279_v26 = vld [vmem:[%s443_s6] ss:$0 sm:$0xff]  ;;  %s262_s5 = sshll.u32 %s357_s4, 4  ;;  %s263_s5 = int_to_ptr.vmem [resolvable:$true] %s262_s5 }
   0xc   :  { %305 = vmatprep.subr.bf16.mxu1 %v355_v1  ;;  %s333_s6 = scalar_lea.vmem %s263_s5, 128  ;;  %p338_p1 = scmp.lt.s32.totalorder %s263_s5, %s263_s5 }
   0xd   :  { %314 = vmatpush3.bf16.msra.mxu0 %v328_v17  ;;  %p334_p0 = scmp.ne.s32.totalorder %s263_s5, %s333_s6  ;;  %p339_p2 = scmp.lt.s32.totalorder %s333_s6, %s333_s6 }
   0xf   :  { %306 = vmatpush3.bf16.msra.mxu1 %v326_v7  ;;  %p340_p3 = por %p339_p2, %p338_p1 }
  0x11   :  { %p341_p4 = pnand %p340_p3, %p334_p0 }
  0xc5   :  { %v83_v10 = vpop.f32.mrf.mxu0 }
  0xc6   :  { %v84_v11 = vadd.f32 %v270_v9, %v83_v10 }
  0xc7   :  { %v297_v12 = vpop.f32.mrf.mxu0 }
  0xc8   :  { %v89_v13 = vmax.f32 %v84_v11, 0.0 }
  0xc9   :  { %v86_v14 = vpop.f32.mrf.mxu0 }
  0xca   :  { %v90_v15 = vpack.c.bf16 %v89_v13, %v89_v13 }
  0xcb   :  { %v298_v16 = vpop.f32.mrf.mxu0 }
  0xcc   :  { %308 = vmatmul.mubr.msk.bf16.vlgmr.msra.gmra.mxu1 %vm130_vm2, %v90_v15 }
 0x18c   :  { %v168_v19 = vpop.f32.mrf.mxu1 }
 0x18d   :  { %v169_v20 = vadd.f32 %v273_v18, %v168_v19 }
 0x18e   :  { %v309_v21 = vpop.f32.mrf.mxu1 }
 0x18f   :  { %v174_v22 = vmax.f32 %v169_v20, 0.0 }
 0x190   :  { %v171_v23 = vpop.f32.mrf.mxu1 }
 0x191   :  { %v175_v24 = vpack.c.bf16 %v174_v22, %v174_v22 }
 0x192   :  { %v310_v25 = vpop.f32.mrf.mxu1 }
 0x193   :  { %316 = vmatmul.mubr.msk.bf16.vlgmr.msra.gmra.mxu0 %vm199_vm3, %v175_v24 }
 0x253   :  { %v237_v27 = vpop.f32.mrf.mxu0 }
 0x254   :  { %v238_v28 = vadd.f32 %v279_v26, %v237_v27 }
 0x255   :  { %v317_v29 = vpop.f32.mrf.mxu0 }
 0x256   :  { %v244_v30 = vsel %vm243_vm4, %v238_v28, -inf }
 0x257   :  { %245 = vmax.xlane.f32.xlu0 %v244_v30  ;;  %v240_v31 = vpop.f32.mrf.mxu0 }
 0x259   :  { %v318_v32 = vpop.f32.mrf.mxu0 }
 0x2e0   :  { %v246_v33 = vpop.xlane.xlu0 %245 }
 0x2e1   :  { %v247_v34 = vsub.f32 %v238_v28, %v246_v33 }
 0x2e3   :  { %v248_v35 = vmul.f32 1.442695, %v247_v34 }
 0x2e5   :  { %329 = vpow2.f32 %v248_v35 }
 0x2f2   :  { %v330_v36 = vpop.eup %329 }
 0x2f3   :  { %v250_v37 = vsel %vm243_vm4, %v330_v36, 0.0 }
 0x2f4   :  { %251 = vadd.xlane.f32.xlu0 %v250_v37 }
 0x37d   :  { %v252_v38 = vpop.xlane.xlu0 %251 }
 0x37e   :  { %331 = vrcp.f32 %v252_v38 }
 0x38b   :  { %v332_v39 = vpop.eup %331 }
 0x38c   :  { %v254_v40 = vmul.f32 %v332_v39, %v330_v36 }
 0x38e   :  { %255 = vst.msk [vmem:[#allocation2] sm:$0xff] %vm243_vm4, %v254_v40 }
 0x38f   :  { %344 = shalt.err (!%p341_p4)
}
 0x390   :  { %265 = dma.vmem_to_hbm [thread:$0]  %s263_s5, 128, %s444_s7, [#allocation3]  }
 0x391   :  { %353 = dma.done.wait [#allocation3], 128  }
 0x392   :  { %354 = vsyncadd [#allocation3], 4294967168 }
 0x393   :  { %269 = vsyncpa [#allocation3], 1 }

</bundles_post_ra>
